<compile_context>
chip_gen: v6e
topology: v6e:2x2x1
jax: 0.10.0
libtpu: 0.0.40
codegen_flags: <defaults>
</compile_context>

<pallas_src>
from functools import partial

import jax
import jax.numpy as jnp
from jax.experimental import pallas as pl
from jax.experimental.pallas import tpu as pltpu


# --------------------------------------------------------------------------------------
# Kernels
# --------------------------------------------------------------------------------------
def _enhanced_se_kernel(params_ref, x_ref, o_ref):
    # params_ref (SMEM, f32[12]):
    #   [0:3] fc[0] weights (r,g,b), [3:6] fc[2] weights (r,g,b),
    #   [6:9] weighted_fusion 1x1-conv weights, [9] se fc[0], [10] se fc[2],
    #   [11] true 1/HW (HW may be lane-padded to hwp inside the block).
    # x_ref: (TB, 3*hwp) native dtype; o_ref: (TB, hwp) native dtype.
    hwp = o_ref.shape[-1]
    inv_hw = params_ref[11]

    # Hoist scalar params once (avoid repeated sld/broadcast in the unrolled loop).
    w1 = [params_ref[c] for c in range(3)]
    w2 = [params_ref[3 + c] for c in range(3)]
    wf = [params_ref[6 + c] for c in range(3)]
    w_se0, w_se1 = params_ref[9], params_ref[10]

    # Phase A: (TB,1) statistics only -- per-channel mean -> gate -> fusion coefficient.
    coeff = []
    mean_f = None
    for c in range(3):
        xc = x_ref[:, c * hwp:(c + 1) * hwp].astype(jnp.float32)
        mean_c = jnp.sum(xc, axis=-1, keepdims=True) * inv_hw      # AdaptiveAvgPool2d(1)
        gate_c = jax.nn.sigmoid(w2[c] * jnp.maximum(w1[c] * mean_c, 0.0))
        coeff.append(wf[c] * gate_c)                               # conv weight * gate
        mf = coeff[c] * mean_c                                     # mean(coeff*xc) == coeff*mean(xc)
        mean_f = mf if mean_f is None else mean_f + mf

    gate_f = jax.nn.sigmoid(w_se1 * jnp.maximum(w_se0 * mean_f, 0.0))

    # Phase B: single output pass with pre-combined per-row scalars (no fused accumulator).
    s = [coeff[c] * gate_f for c in range(3)]
    out = (s[0] * x_ref[:, 0:hwp].astype(jnp.float32)
           + s[1] * x_ref[:, hwp:2 * hwp].astype(jnp.float32)
           + s[2] * x_ref[:, 2 * hwp:3 * hwp].astype(jnp.float32))
    o_ref[...] = out.astype(o_ref.dtype)


def _enhanced_se_tiled_kernel(params_ref, means_ref, xr_ref, xg_ref, xb_ref, o_ref):
    # Large-HW path: per-(b,c) means precomputed in the wrapper (means_ref: (TB,3) f32),
    # this kernel only runs the (recomputed-per-tile, negligible) gate math + apply pass.
    w_se0, w_se1 = params_ref[9], params_ref[10]
    coeff = []
    mean_f = None
    for c in range(3):
        mean_c = means_ref[:, c:c + 1]                             # (TB,1) f32
        gate_c = jax.nn.sigmoid(params_ref[3 + c]
                                * jnp.maximum(params_ref[c] * mean_c, 0.0))
        coeff.append(params_ref[6 + c] * gate_c)
        mf = coeff[c] * mean_c
        mean_f = mf if mean_f is None else mean_f + mf
    gate_f = jax.nn.sigmoid(w_se1 * jnp.maximum(w_se0 * mean_f, 0.0))

    out = ((coeff[0] * gate_f) * xr_ref[...].astype(jnp.float32)
           + (coeff[1] * gate_f) * xg_ref[...].astype(jnp.float32)
           + (coeff[2] * gate_f) * xb_ref[...].astype(jnp.float32))
    o_ref[...] = out.astype(o_ref.dtype)


# --------------------------------------------------------------------------------------
# Tiling heuristics
# --------------------------------------------------------------------------------------
def _chip_budget():
    """(target_block_bytes, vmem_limit_cap, min_grid_steps) from the chip generation."""
    vmem_bytes = 64 << 20                     # conservative default (v7x per-TC VMEM)
    try:
        vmem_bytes = int(pltpu.get_tpu_info().vmem_capacity_bytes)
    except Exception:
        pass
    if vmem_bytes >= (100 << 20):             # v5e / v6e: 128 MiB physical VMEM
        return 12 << 20, 96 << 20, 2
    # v7x-class: 64 MiB per TC, 2 TCs per chip -> want >= 4 grid steps for pipelining.
    return 6 << 20, 44 << 20, 4


def _pick_batch_tile(B, row_bytes, itemsize, target_block_bytes, min_steps):
    """Largest batch tile TB dividing B that is sublane-packed for the dtype
    (8 rows f32, 16 rows bf16, 32 rows int8/fp8), fits the block-byte budget and
    leaves >= min_steps grid steps when possible.  Falls back to the smallest
    legal tile -- never silently to the whole batch."""
    sub = max(8, 32 // max(itemsize, 1))
    cands = sorted({d for d in range(sub, B + 1, sub) if B % d == 0} | {B})
    fitting = [d for d in cands if d * row_bytes <= target_block_bytes]
    if not fitting:
        return cands[0]
    for want in (min_steps, 2, 1):
        ok = [d for d in fitting if (B // d) >= want]
        if ok:
            return ok[-1]
    return fitting[-1]


def _min_batch_tile(B, itemsize):
    sub = max(8, 32 // max(itemsize, 1))
    for d in range(sub, B + 1, sub):
        if B % d == 0:
            return d
    return B


def _pick_hw_tile(HWp, TB, itemsize, target_block_bytes):
    """Largest multiple of 128 dividing HWp such that the ~4 blocks (3 in + 1 out)
    of that width stay within the per-step byte budget."""
    n128 = HWp // 128
    for d in range(n128, 0, -1):
        if n128 % d == 0 and 4 * TB * (128 * d) * itemsize <= target_block_bytes:
            return 128 * d
    return 128


# --------------------------------------------------------------------------------------
# Wrapper
# --------------------------------------------------------------------------------------
@partial(jax.jit, static_argnames=("force_tiled",))
def enhanced_se_attention(x, params, force_tiled=False):
    """x: (B, 3, H, W) NCHW (f32 or bf16); params: (11,) f32. Returns (B, 1, H, W)."""
    B, C, H, W = x.shape
    assert C == 3, "forward unpacks torch.split(x, 1, dim=1) into exactly 3 channels"
    HW = H * W
    itemsize = jnp.dtype(x.dtype).itemsize

    # Lane-dense padding of the spatial axis; true divisor 1/HW travels in SMEM params.
    HWp = ((HW + 127) // 128) * 128
    x3 = x.reshape(B, C, HW)
    x_pad = x3 if HWp == HW else jnp.pad(x3, ((0, 0), (0, 0), (0, HWp - HW)))
    x_flat = x_pad.reshape(B, C * HWp)        # native dtype; upcast happens in-kernel

    params12 = jnp.concatenate([params.astype(jnp.float32),
                                jnp.array([1.0 / HW], dtype=jnp.float32)])

    target_block, vmem_cap, min_steps = _chip_budget()
    row_bytes = C * HWp * itemsize
    TB = _pick_batch_tile(B, row_bytes, itemsize, target_block, min_steps)
    use_tiled = force_tiled or (TB * row_bytes > target_block)

    if not use_tiled:
        in_bytes = TB * row_bytes
        out_bytes = TB * HWp * itemsize
        vmem_limit = int(max(min(2 * (in_bytes + out_bytes) + (2 << 20), vmem_cap),
                             16 << 20))
        out = pl.pallas_call(
            _enhanced_se_kernel,
            out_shape=jax.ShapeDtypeStruct((B, HWp), x.dtype),
            grid=(B // TB,),
            in_specs=[
                pl.BlockSpec(memory_space=pltpu.MemorySpace.SMEM),   # 12 scalar params
                pl.BlockSpec((TB, C * HWp), lambda b: (b, 0)),       # sublane/lane-dense tile
            ],
            out_specs=pl.BlockSpec((TB, HWp), lambda b: (b, 0)),     # unmasked lane-dense stores
            compiler_params=pltpu.CompilerParams(
                dimension_semantics=("parallel",),
                vmem_limit_bytes=vmem_limit,
            ),
        )(params12, x_flat)
    else:
        # Large-HW path: per-(b,c) means from XLA (true HW, pre-padding), HW-tiled apply.
        means = jnp.mean(x3.astype(jnp.float32), axis=-1)            # (B, 3)
        TBt = _min_batch_tile(B, itemsize)
        THW = _pick_hw_tile(HWp, TBt, itemsize, target_block)
        nH = HWp // THW
        in_bytes = 3 * TBt * THW * itemsize
        out_bytes = TBt * THW * itemsize
        vmem_limit = int(max(min(2 * (in_bytes + out_bytes) + (4 << 20), vmem_cap),
                             16 << 20))

        def chan_spec(c):
            # channel c's HW tile h lives at lane-block index c*nH + h of (B, 3*HWp)
            return pl.BlockSpec((TBt, THW), lambda b, h, c=c: (b, c * nH + h))

        out = pl.pallas_call(
            _enhanced_se_tiled_kernel,
            out_shape=jax.ShapeDtypeStruct((B, HWp), x.dtype),
            grid=(B // TBt, nH),
            in_specs=[
                pl.BlockSpec(memory_space=pltpu.MemorySpace.SMEM),
                pl.BlockSpec((TBt, 3), lambda b, h: (b, 0)),          # per-row means
                chan_spec(0), chan_spec(1), chan_spec(2),
            ],
            out_specs=pl.BlockSpec((TBt, THW), lambda b, h: (b, h)),
            compiler_params=pltpu.CompilerParams(
                dimension_semantics=("parallel", "parallel"),
                vmem_limit_bytes=vmem_limit,
            ),
        )(params12, means, x_flat, x_flat, x_flat)

    if HWp != HW:
        out = out[:, :HW]
    return out.reshape(B, 1, H, W)


# --------------------------------------------------------------------------------------
# Plain-JAX reference (replica of the PyTorch forward with channel=1, reduction=1)
# --------------------------------------------------------------------------------------
def reference(x, params):
    B = x.shape[0]
    x = x.astype(jnp.float32)
    scaled = []
    for c in range(3):
        xc = x[:, c:c + 1]                                   # (B,1,H,W)
        m = xc.mean(axis=(2, 3)).reshape(B)                  # avg pool -> (B,)
        g = jax.nn.sigmoid(params[3 + c] * jnp.maximum(params[c] * m, 0.0))
        scaled.append(xc * g[:, None, None, None])
    fused = params[6] * scaled[0] + params[7] * scaled[1] + params[8] * scaled[2]
    mf = fused.mean(axis=(2, 3)).reshape(B)
    gf = jax.nn.sigmoid(params[10] * jnp.maximum(params[9] * mf, 0.0))
    return fused * gf[:, None, None, None]


if __name__ == "__main__":
    key = jax.random.PRNGKey(0)
    k_x, k_w1, k_w2, k_conv, k_se = jax.random.split(key, 5)

    B, C, H, W = 16, 3, 16, 16                 # HW = 256 (multiple of 128)
    x = jax.random.normal(k_x, (B, C, H, W), dtype=jnp.float32)

    # Deterministic synthetic parameters (channel=1, reduction=1):
    w1_rgb = jax.random.normal(k_w1, (3,), jnp.float32) * 0.5   # fc[0] of r/g/b attention
    w2_rgb = jax.random.normal(k_w2, (3,), jnp.float32) * 0.5   # fc[2] of r/g/b attention
    w_conv = jax.random.normal(k_conv, (3,), jnp.float32) * 0.5  # weighted_fusion 1x1 conv
    w_se = jax.random.normal(k_se, (2,), jnp.float32) * 0.5     # se_attention fc[0], fc[2]
    params = jnp.concatenate([w1_rgb, w2_rgb, w_conv, w_se]).astype(jnp.float32)

    ref = reference(x, params)

    # f32, single-pass path
    out = enhanced_se_attention(x, params)
    jax.block_until_ready(out)
    assert out.shape == (B, 1, H, W)
    assert jnp.allclose(out, ref, atol=2e-5, rtol=2e-5), "f32 single-pass mismatch"

    # f32, forced HW-tiled (large-feature-map) path
    out_t = enhanced_se_attention(x, params, force_tiled=True)
    jax.block_until_ready(out_t)
    assert jnp.allclose(out_t, ref, atol=2e-5, rtol=2e-5), "f32 HW-tiled mismatch"

    # bf16 path: native-dtype DMA, 16-row sublane-packed tiles, in-kernel f32 math
    x_bf16 = x.astype(jnp.bfloat16)
    out_bf = enhanced_se_attention(x_bf16, params)
    jax.block_until_ready(out_bf)
    assert out_bf.dtype == jnp.bfloat16
    assert jnp.allclose(out_bf.astype(jnp.float32), ref, atol=1e-1, rtol=1e-1), "bf16 mismatch"

    # HW not a multiple of 128: lane-padding + true 1/HW divisor path
    x_small = jax.random.normal(k_x, (4, 3, 10, 10), dtype=jnp.float32)
    out_s = enhanced_se_attention(x_small, params)
    jax.block_until_ready(out_s)
    ref_s = reference(x_small, params)
    assert out_s.shape == (4, 1, 10, 10)
    assert jnp.allclose(out_s, ref_s, atol=2e-5, rtol=2e-5), "padded-HW mismatch"

    print("KERNEL_OK")
</pallas_src>

<mosaic_0001>
module attributes {stable_mosaic.version = 11 : i64} {
  func.func @_enhanced_se_kernel(%arg0: i32, %arg1: memref<12xf32, #tpu.memory_space<smem>>, %arg2: memref<8x768xf32, #tpu.memory_space<vmem>>, %arg3: memref<8x256xf32, #tpu.memory_space<vmem>>) attributes {dimension_semantics = [#tpu.dimension_semantics<parallel>], iteration_bounds = array<i64: 2>, scalar_prefetch = 0 : i64, scratch_operands = 0 : i64, tpu.core_type = #tpu.core_type<tc>, window_params = [{transform_indices = @transform_0, window_bounds = array<i64: 12>}, {transform_indices = @transform_1, window_bounds = array<i64: 8, 768>}, {transform_indices = @transform_2, window_bounds = array<i64: 8, 256>}]} {
    %c11 = arith.constant 11 : index
    %0 = memref.load %arg1[%c11] : memref<12xf32, #tpu.memory_space<smem>>
    %c0 = arith.constant 0 : index
    %1 = memref.load %arg1[%c0] : memref<12xf32, #tpu.memory_space<smem>>
    %c1 = arith.constant 1 : index
    %2 = memref.load %arg1[%c1] : memref<12xf32, #tpu.memory_space<smem>>
    %c2 = arith.constant 2 : index
    %3 = memref.load %arg1[%c2] : memref<12xf32, #tpu.memory_space<smem>>
    %c3 = arith.constant 3 : index
    %4 = memref.load %arg1[%c3] : memref<12xf32, #tpu.memory_space<smem>>
    %c4 = arith.constant 4 : index
    %5 = memref.load %arg1[%c4] : memref<12xf32, #tpu.memory_space<smem>>
    %c5 = arith.constant 5 : index
    %6 = memref.load %arg1[%c5] : memref<12xf32, #tpu.memory_space<smem>>
    %c6 = arith.constant 6 : index
    %7 = memref.load %arg1[%c6] : memref<12xf32, #tpu.memory_space<smem>>
    %c7 = arith.constant 7 : index
    %8 = memref.load %arg1[%c7] : memref<12xf32, #tpu.memory_space<smem>>
    %c8 = arith.constant 8 : index
    %9 = memref.load %arg1[%c8] : memref<12xf32, #tpu.memory_space<smem>>
    %c9 = arith.constant 9 : index
    %10 = memref.load %arg1[%c9] : memref<12xf32, #tpu.memory_space<smem>>
    %c10 = arith.constant 10 : index
    %11 = memref.load %arg1[%c10] : memref<12xf32, #tpu.memory_space<smem>>
    %c0_0 = arith.constant 0 : index
    %c0_1 = arith.constant 0 : index
    %12 = vector.load %arg2[%c0_0, %c0_1] : memref<8x768xf32, #tpu.memory_space<vmem>>, vector<8x256xf32>
    %cst = arith.constant dense<0.000000e+00> : vector<8xf32>
    %13 = vector.multi_reduction <add>, %12, %cst [1] : vector<8x256xf32> to vector<8xf32>
    %14 = vector.shape_cast %13 : vector<8xf32> to vector<8x1xf32>
    %15 = vector.broadcast %0 : f32 to vector<8x1xf32>
    %16 = arith.mulf %14, %15 : vector<8x1xf32>
    %17 = vector.broadcast %1 : f32 to vector<8x1xf32>
    %18 = arith.mulf %17, %16 : vector<8x1xf32>
    %cst_2 = arith.constant 0.000000e+00 : f32
    %19 = vector.broadcast %cst_2 : f32 to vector<8x1xf32>
    %20 = arith.maximumf %18, %19 : vector<8x1xf32>
    %21 = vector.broadcast %4 : f32 to vector<8x1xf32>
    %22 = arith.mulf %21, %20 : vector<8x1xf32>
    %23 = arith.negf %22 : vector<8x1xf32>
    %24 = math.exp %23 : vector<8x1xf32>
    %cst_3 = arith.constant 1.000000e+00 : f32
    %25 = vector.broadcast %cst_3 : f32 to vector<8x1xf32>
    %26 = arith.addf %25, %24 : vector<8x1xf32>
    %27 = arith.divf %25, %26 : vector<8x1xf32>
    %28 = vector.broadcast %7 : f32 to vector<8x1xf32>
    %29 = arith.mulf %28, %27 : vector<8x1xf32>
    %30 = arith.mulf %29, %16 : vector<8x1xf32>
    %c0_4 = arith.constant 0 : index
    %c256 = arith.constant 256 : index
    %31 = vector.load %arg2[%c0_4, %c256] : memref<8x768xf32, #tpu.memory_space<vmem>>, vector<8x256xf32>
    %cst_5 = arith.constant dense<0.000000e+00> : vector<8xf32>
    %32 = vector.multi_reduction <add>, %31, %cst_5 [1] : vector<8x256xf32> to vector<8xf32>
    %33 = vector.shape_cast %32 : vector<8xf32> to vector<8x1xf32>
    %34 = vector.broadcast %0 : f32 to vector<8x1xf32>
    %35 = arith.mulf %33, %34 : vector<8x1xf32>
    %36 = vector.broadcast %2 : f32 to vector<8x1xf32>
    %37 = arith.mulf %36, %35 : vector<8x1xf32>
    %cst_6 = arith.constant 0.000000e+00 : f32
    %38 = vector.broadcast %cst_6 : f32 to vector<8x1xf32>
    %39 = arith.maximumf %37, %38 : vector<8x1xf32>
    %40 = vector.broadcast %5 : f32 to vector<8x1xf32>
    %41 = arith.mulf %40, %39 : vector<8x1xf32>
    %42 = arith.negf %41 : vector<8x1xf32>
    %43 = math.exp %42 : vector<8x1xf32>
    %cst_7 = arith.constant 1.000000e+00 : f32
    %44 = vector.broadcast %cst_7 : f32 to vector<8x1xf32>
    %45 = arith.addf %44, %43 : vector<8x1xf32>
    %46 = arith.divf %44, %45 : vector<8x1xf32>
    %47 = vector.broadcast %8 : f32 to vector<8x1xf32>
    %48 = arith.mulf %47, %46 : vector<8x1xf32>
    %49 = arith.mulf %48, %35 : vector<8x1xf32>
    %50 = arith.addf %30, %49 : vector<8x1xf32>
    %c0_8 = arith.constant 0 : index
    %c512 = arith.constant 512 : index
    %51 = vector.load %arg2[%c0_8, %c512] : memref<8x768xf32, #tpu.memory_space<vmem>>, vector<8x256xf32>
    %cst_9 = arith.constant dense<0.000000e+00> : vector<8xf32>
    %52 = vector.multi_reduction <add>, %51, %cst_9 [1] : vector<8x256xf32> to vector<8xf32>
    %53 = vector.shape_cast %52 : vector<8xf32> to vector<8x1xf32>
    %54 = vector.broadcast %0 : f32 to vector<8x1xf32>
    %55 = arith.mulf %53, %54 : vector<8x1xf32>
    %56 = vector.broadcast %3 : f32 to vector<8x1xf32>
    %57 = arith.mulf %56, %55 : vector<8x1xf32>
    %cst_10 = arith.constant 0.000000e+00 : f32
    %58 = vector.broadcast %cst_10 : f32 to vector<8x1xf32>
    %59 = arith.maximumf %57, %58 : vector<8x1xf32>
    %60 = vector.broadcast %6 : f32 to vector<8x1xf32>
    %61 = arith.mulf %60, %59 : vector<8x1xf32>
    %62 = arith.negf %61 : vector<8x1xf32>
    %63 = math.exp %62 : vector<8x1xf32>
    %cst_11 = arith.constant 1.000000e+00 : f32
    %64 = vector.broadcast %cst_11 : f32 to vector<8x1xf32>
    %65 = arith.addf %64, %63 : vector<8x1xf32>
    %66 = arith.divf %64, %65 : vector<8x1xf32>
    %67 = vector.broadcast %9 : f32 to vector<8x1xf32>
    %68 = arith.mulf %67, %66 : vector<8x1xf32>
    %69 = arith.mulf %68, %55 : vector<8x1xf32>
    %70 = arith.addf %50, %69 : vector<8x1xf32>
    %71 = vector.broadcast %10 : f32 to vector<8x1xf32>
    %72 = arith.mulf %71, %70 : vector<8x1xf32>
    %cst_12 = arith.constant 0.000000e+00 : f32
    %73 = vector.broadcast %cst_12 : f32 to vector<8x1xf32>
    %74 = arith.maximumf %72, %73 : vector<8x1xf32>
    %75 = vector.broadcast %11 : f32 to vector<8x1xf32>
    %76 = arith.mulf %75, %74 : vector<8x1xf32>
    %77 = arith.negf %76 : vector<8x1xf32>
    %78 = math.exp %77 : vector<8x1xf32>
    %cst_13 = arith.constant 1.000000e+00 : f32
    %79 = vector.broadcast %cst_13 : f32 to vector<8x1xf32>
    %80 = arith.addf %79, %78 : vector<8x1xf32>
    %81 = arith.divf %79, %80 : vector<8x1xf32>
    %82 = arith.mulf %29, %81 : vector<8x1xf32>
    %83 = arith.mulf %48, %81 : vector<8x1xf32>
    %84 = arith.mulf %68, %81 : vector<8x1xf32>
    %c0_14 = arith.constant 0 : index
    %c0_15 = arith.constant 0 : index
    %85 = vector.load %arg2[%c0_14, %c0_15] : memref<8x768xf32, #tpu.memory_space<vmem>>, vector<8x256xf32>
    %86 = vector.broadcast %82 : vector<8x1xf32> to vector<8x256xf32>
    %87 = arith.mulf %86, %85 : vector<8x256xf32>
    %c0_16 = arith.constant 0 : index
    %c256_17 = arith.constant 256 : index
    %88 = vector.load %arg2[%c0_16, %c256_17] : memref<8x768xf32, #tpu.memory_space<vmem>>, vector<8x256xf32>
    %89 = vector.broadcast %83 : vector<8x1xf32> to vector<8x256xf32>
    %90 = arith.mulf %89, %88 : vector<8x256xf32>
    %91 = arith.addf %87, %90 : vector<8x256xf32>
    %c0_18 = arith.constant 0 : index
    %c512_19 = arith.constant 512 : index
    %92 = vector.load %arg2[%c0_18, %c512_19] : memref<8x768xf32, #tpu.memory_space<vmem>>, vector<8x256xf32>
    %93 = vector.broadcast %84 : vector<8x1xf32> to vector<8x256xf32>
    %94 = arith.mulf %93, %92 : vector<8x256xf32>
    %95 = arith.addf %91, %94 : vector<8x256xf32>
    %c0_20 = arith.constant 0 : index
    %c0_21 = arith.constant 0 : index
    %96 = vector.load %arg3[%c0_20, %c0_21] : memref<8x256xf32, #tpu.memory_space<vmem>>, vector<8x256xf32>
    tpu.vector_store %arg3[%c0_20, %c0_21], %95 {strides = array<i32>} : memref<8x256xf32, #tpu.memory_space<vmem>>, vector<8x256xf32>,
    return
  }
  func.func @transform_0(%arg0: i32) -> i32 {
    %c0_i32 = arith.constant 0 : i32
    %c0_i32_0 = arith.constant 0 : i32
    return %c0_i32 : i32
  }
  func.func @transform_1(%arg0: i32) -> (i32, i32) {
    %c0_i32 = arith.constant 0 : i32
    %c0_i32_0 = arith.constant 0 : i32
    return %arg0, %c0_i32 : i32, i32
  }
  func.func @transform_2(%arg0: i32) -> (i32, i32) {
    %c0_i32 = arith.constant 0 : i32
    %c0_i32_0 = arith.constant 0 : i32
    return %arg0, %c0_i32 : i32, i32
  }
}

</mosaic_0001>

<bundles_post_ra>
// kernel: enhanced_se_attention.1
= control target key start
LH: loop header
LB: loop body
LE: loop exit
PB: predicated region body
PF: predicated region fallthrough
CT: control target
= control target key end

     0   :  { %7 = vsyncpa [#allocation3], 0  ;;  %s433_s9 = smov 0   ;;  %s492_s0 = inlined_call_operand.vmem [shape: f32[12], index: 0, kind: input, shape index: {}]   ;;  %s493_s1 = inlined_call_operand.vmem [shape: f32[16,768], index: 1, kind: input, shape index: {}]   ;;  %s494_s2 = inlined_call_operand.vmem [shape: f32[16,256], index: 2, kind: output, shape index: {}]  }
   0x1 LB: > { %s326_s10 = sadd.s32 4294967295, %s415_s9   ;;  %p328_p0 = scmp.ge.s32.totalorder %s415_s9, 1  ;;  %s415_s9 = sphi %s433_s9, %s13_s9  }
   0x2   : > { %p91_p1 = scmp.lt.s32.totalorder %s415_s9, 3  ;;  %s104_s13 = sshll.u32 %s492_s0, 4  ;;  %s105_s13 = int_to_ptr.vmem [resolvable:$true] %s104_s13 }
   0x3   : > { %p363_p3 = scmp.eq.s32.totalorder %s326_s10, 0  ;;  %s390_s15 = scalar_lea.vmem %s105_s13, 16 }
   0x4   : > { %p444_p2 = pnand %p328_p0, %p91_p1  ;;  %p391_p6 = scmp.ne.s32.totalorder %s105_s13, %s390_s15 }
   0x5   : > { %p398_p10 = scmp.lt.s32.totalorder %s105_s13, %s105_s13  ;;  %p399_p11 = scmp.lt.s32.totalorder %s390_s15, %s390_s15 }
   0x6   : > { %p359_p4 = pneg %p444_p2 }
   0x7   : > { %p400_p12 = por %p399_p11, %p398_p10 }
   0x8   : > { %p360_p5 = pnand %p363_p3, %p359_p4 }
   0xa   : > { %p392_p7 = pneg %p360_p5 }
   0xc   : > { %p393_p8 = pnand %p392_p7, %p391_p6 }
   0xe   : > { %p394_p9 = pneg %p393_p8 }
  0x10   : > { %p401_p13 = pnand %p400_p12, %p394_p9 }
  0x12   : > { %404 = shalt.err (!%p401_p13)
}
  0x13   : > { %s417_s16 = smov [#allocation2]   ;;  %125 = sbr.rel (%p444_p2) target bundleno = 274 (0x112), region = 28 }
  0x14   : > { %362 = dma.vmem_to_smem (!%p360_p5), %s105_s13, 16, %s417_s16, [#allocation3]  }
  0x18   : > { %410 = dma.done.wait (%p363_p3), [#allocation3], 16  }
  0x19   : > { %412 = vsyncadd (%p363_p3), [#allocation3], 4294967280 }
  0x1a   : > { %131 = sfence }
  0x1b   : > { %p148_p0 = scmp.lt.s32.totalorder %s326_s10, 1  ;;  %s336_s21 = sld [smem:[#allocation2 + $0xb]] }
  0x1c   : > { %s338_s22 = sld [smem:[#allocation2 + $0x2]] }
  0x1d   : > { %s497_s10 = smov (!%p148_p0, %s326_s10), 1  ;;  %s159_s23 = sld [smem:[#allocation2]] }
  0x1e   : > { %s354_s17 = smul.u32 48, %s497_s10  ;;  %s341_s24 = sld [smem:[#allocation2 + $0x5]] }
  0x1f   : > { %s339_s25 = sld [smem:[#allocation2 + $0x3]]  ;;  %s353_s5 = sshll.u32 %s497_s10, 4 }
  0x20   : > { %s152_s20 = scalar_lea.vmem %s493_s1, %s354_s17  ;;  %s337_s26 = sld [smem:[#allocation2 + $0x1]] }
  0x21   : > { %v461_v0 = vld [vmem:[%s152_s20 + $0x20] sm:$0xff]  ;;  %v463_v1 = vld [vmem:[%s152_s20 + $0x28] sm:$0xff]  ;;  %v471_v5 = vld [vmem:[%s152_s20 + $0x10] sm:$0xff]  ;;  %v175_v9 = vstv %s336_s21  ;;  %s340_s27 = sld [smem:[#allocation2 + $0x4]]  ;;  %s157_s8 = scalar_lea.vmem %s494_s2, %s353_s5 }
  0x22   : > { %v465_v2 = vld [vmem:[%s152_s20] sm:$0xff]  ;;  %v214_v3 = vadd.f32 %v463_v1, %v461_v0  ;;  %v469_v4 = vld [vmem:[%s152_s20 + $0x8] sm:$0xff]  ;;  %v473_v6 = vld [vmem:[%s152_s20 + $0x18] sm:$0xff]  ;;  %v218_v10 = vstv %s338_s22  ;;  %s342_s28 = sld [smem:[#allocation2 + $0x6]] }
  0x23   : > { %v172_v7 = vadd.f32 %v469_v4, %v465_v2  ;;  %v193_v8 = vadd.f32 %v473_v6, %v471_v5  ;;  %v177_v13 = vstv %s159_s23  ;;  %s344_s29 = sld [smem:[#allocation2 + $0x8]] }
  0x24   : > { %215 = vadd.xlane.f32.xlu1 %v214_v3  ;;  %v221_v17 = vstv %s341_s24  ;;  %s343_s30 = sld [smem:[#allocation2 + $0x7]] }
  0x25   : > { %173 = vadd.xlane.f32.xlu0 %v172_v7  ;;  %v180_v20 = vstv %s339_s25  ;;  %s345_s3 = sld [smem:[#allocation2 + $0x9]] }
  0x26   : > { %v197_v21 = vstv %s337_s26  ;;  %s346_s4 = sld [smem:[#allocation2 + $0xa]] }
  0x27   : > { %v200_v29 = vstv %s340_s27 }
  0x28   : > { %v188_v41 = vstv %s342_s28 }
  0x29   : > { %194 = vadd.xlane.f32.xlu0 %v193_v8  ;;  %v229_v43 = vstv %s344_s29 }
  0x2a   : > { %v208_v44 = vstv %s343_s30 }
  0x2b   : > { %v233_v53 = vstv %s345_s3 }
  0x2c   : > { %v236_v56 = vstv %s346_s4 }
  0xad   : > { %v216_v11 = vpop.xlane.xlu1 %215 }
  0xae   : > { %v217_v12 = vmul.f32 %v216_v11, %v175_v9  ;;  %v174_v14 = vpop.xlane.xlu0 %173 }
  0xaf   : > { %v176_v15 = vmul.f32 %v175_v9, %v174_v14 }
  0xb0   : > { %v219_v16 = vmul.f32 %v218_v10, %v217_v12 }
  0xb1   : > { %v178_v18 = vmul.f32 %v177_v13, %v176_v15 }
  0xb2   : > { %v220_v19 = vmax.f32 %v219_v16, 0.0  ;;  %v195_v22 = vpop.xlane.xlu0 %194 }
  0xb3   : > { %v179_v23 = vmax.f32 %v178_v18, 0.0  ;;  %v196_v24 = vmul.f32 %v195_v22, %v175_v9 }
  0xb4   : > { %v222_v25 = vmul.f32 %v221_v17, %v220_v19 }
  0xb5   : > { %v181_v26 = vmul.f32 %v180_v20, %v179_v23  ;;  %v198_v27 = vmul.f32 %v197_v21, %v196_v24 }
  0xb6   : > { %v349_v28 = vmul.f32 -1.442695, %v222_v25 }
  0xb7   : > { %v347_v30 = vmul.f32 -1.442695, %v181_v26  ;;  %v199_v31 = vmax.f32 %v198_v27, 0.0 }
  0xb8   : > { %374 = vpow2.f32 %v349_v28 }
  0xb9   : > { %376 = vpow2.f32 %v347_v30  ;;  %v201_v32 = vmul.f32 %v200_v29, %v199_v31 }
  0xbb   : > { %v348_v33 = vmul.f32 -1.442695, %v201_v32 }
  0xbd   : > { %378 = vpow2.f32 %v348_v33 }
  0xc5   : > { %v375_v34 = vpop.eup %374 }
  0xc6   : > { %v377_v35 = vpop.eup %376  ;;  %v226_v36 = vadd.f32 1.0, %v375_v34 }
  0xc7   : > { %v185_v37 = vadd.f32 1.0, %v377_v35 }
  0xc9   : > { %380 = vrcp.f32 %v185_v37 }
  0xca   : > { %v379_v38 = vpop.eup %378  ;;  %382 = vrcp.f32 %v226_v36 }
  0xcb   : > { %v205_v39 = vadd.f32 1.0, %v379_v38 }
  0xcd   : > { %384 = vrcp.f32 %v205_v39 }
  0xd6   : > { %v381_v40 = vpop.eup %380 }
  0xd7   : > { %v383_v42 = vpop.eup %382  ;;  %v189_v45 = vmul.f32 %v381_v40, %v188_v41 }
  0xd8   : > { %v230_v47 = vmul.f32 %v383_v42, %v229_v43 }
  0xd9   : > { %v190_v49 = vmul.f32 %v189_v45, %v176_v15 }
  0xda   : > { %v385_v46 = vpop.eup %384  ;;  %v231_v51 = vmul.f32 %v230_v47, %v217_v12 }
  0xdb   : > { %v209_v48 = vmul.f32 %v385_v46, %v208_v44 }
  0xdd   : > { %v210_v50 = vmul.f32 %v209_v48, %v196_v24 }
  0xdf   : > { %v211_v52 = vadd.f32 %v210_v50, %v190_v49 }
  0xe1   : > { %v232_v54 = vadd.f32 %v231_v51, %v211_v52 }
  0xe3   : > { %v234_v55 = vmul.f32 %v233_v53, %v232_v54 }
  0xe5   : > { %v235_v57 = vmax.f32 %v234_v55, 0.0 }
  0xe7   : > { %v237_v58 = vmul.f32 %v236_v56, %v235_v57 }
  0xe9   : > { %v350_v59 = vmul.f32 -1.442695, %v237_v58 }
  0xeb   : > { %386 = vpow2.f32 %v350_v59 }
  0xf8   : > { %v387_v60 = vpop.eup %386 }
  0xf9   : > { %v241_v61 = vadd.f32 1.0, %v387_v60 }
  0xfb   : > { %388 = vrcp.f32 %v241_v61 }
 0x108   : > { %v389_v62 = vpop.eup %388 }
 0x109   : > { %v244_v63 = vmul.f32 %v389_v62, %v189_v45  ;;  %v245_v3 = vmul.f32 %v389_v62, %v209_v48  ;;  %v246_v7 = vmul.f32 %v389_v62, %v230_v47 }
 0x10b   : > { %v247_v8 = vmul.f32 %v244_v63, %v465_v2  ;;  %v248_v9 = vmul.f32 %v244_v63, %v469_v4  ;;  %v249_v10 = vmul.f32 %v245_v3, %v471_v5  ;;  %v250_v11 = vmul.f32 %v245_v3, %v473_v6 }
 0x10c   : > { %v253_v14 = vmul.f32 %v246_v7, %v461_v0  ;;  %v254_v15 = vmul.f32 %v246_v7, %v463_v1 }
 0x10d   : > { %v251_v12 = vadd.f32 %v249_v10, %v247_v8  ;;  %v252_v13 = vadd.f32 %v250_v11, %v248_v9 }
 0x10f   : > { %v255_v16 = vadd.f32 %v253_v14, %v251_v12  ;;  %v256_v17 = vadd.f32 %v254_v15, %v252_v13 }
 0x111   : > { %257 = vst [vmem:[%s157_s8] sm:$0xff] %v255_v16  ;;  %258 = vst [vmem:[%s157_s8 + $0x8] sm:$0xff] %v256_v17 }
 0x112 PF: > { %s13_s9 = sadd.s32 1, %s415_s9  }
 0x113   : > { %p10_p1 = scmp.ge.s32.totalorder %s13_s9, 4  }
 0x115   :  { %12 = sbr.rel (!%p10_p1) target bundleno = 1 (0x1), region = 63 }
 0x11a   :  { %280 = vsyncpa [#allocation3], 1 }
 0x11b   :  { %282 = vsyncpa [#allocation3 + $0x1], 1 }

</bundles_post_ra>
